<compile_context>
chip_gen: v7x
topology: tpu7x:2x2x1
jax: 0.10.0
libtpu: 0.0.40
codegen_flags: <defaults>
</compile_context>

<pallas_src>
import functools

import jax
import jax.numpy as jnp
from jax.experimental import pallas as pl
from jax.experimental.pallas import tpu as pltpu

BN_EPS = 1e-5
TILE_HW = 1024        # flattened-spatial lane tile (sweep 1024..2048 per chip)
_K_CHUNK = 512        # K tile for the hidden x hidden matmul (hidden >= 1024)


def _block_kernel(*refs, has_expand, use_identity, bn, subsample, k_chunk):
    """Fused (conv1x1 + BN + ReLU6) x {2,3} (+ residual) on a (C, lanes) slab."""
    if has_expand:
        x_ref, w1_ref, b1_ref, w2_ref, b2_ref, w3_ref, b3_ref, o_ref = refs
    else:
        x_ref, w2_ref, b2_ref, w3_ref, b3_ref, o_ref = refs
        w1_ref = b1_ref = None

    def chain(x2d):
        """(Cin, P) input slab -> (Cout, P) f32 after the three fused stages."""
        h = x2d.astype(jnp.bfloat16)
        if has_expand:
            h = jnp.dot(w1_ref[...], h, preferred_element_type=jnp.float32)
            h = jnp.clip(h + b1_ref[...], 0.0, 6.0).astype(jnp.bfloat16)
        hidden = w2_ref.shape[1]
        if k_chunk is not None:
            # K-tiled hidden x hidden matmul (static unroll): bounds the f32 /
            # bf16 live ranges for very wide hidden dims so large spatial tiles
            # stay affordable inside v7x's 64 MiB VMEM.  Never triggers at
            # MobileNetV2 channel counts.
            acc = jnp.zeros((w2_ref.shape[0], h.shape[1]), jnp.float32)
            for k0 in range(0, hidden, k_chunk):
                acc = acc + jnp.dot(w2_ref[:, k0:k0 + k_chunk],
                                    h[k0:k0 + k_chunk, :],
                                    preferred_element_type=jnp.float32)
            h2 = acc
        else:
            h2 = jnp.dot(w2_ref[...], h, preferred_element_type=jnp.float32)
        h = jnp.clip(h2 + b2_ref[...], 0.0, 6.0).astype(jnp.bfloat16)
        h = jnp.dot(w3_ref[...], h, preferred_element_type=jnp.float32)
        # NOTE: the reference PyTorch module applies ReLU6 after the projection
        # conv too (conv1x1 == Conv+BN+ReLU6), unlike canonical MobileNetV2.
        return jnp.clip(h + b3_ref[...], 0.0, 6.0)

    if subsample:
        # stride=2: every stage is pointwise, so the spatial subsample commutes
        # with them.  Drop odd rows/cols in VMEM before any matmul: saves 4x
        # MXU work and avoids an XLA-side strided-slice materialization in HBM.
        cin, rows2, w_in = x_ref.shape[1], x_ref.shape[2], x_ref.shape[3]
        rb, wo = rows2 // 2, w_in // 2
        xb = x_ref[0]                                      # (Cin, 2*rb, W)
        xb = xb.reshape(cin, rb, 2 * w_in)[..., :w_in]     # even rows
        xb = xb.reshape(cin, rb, wo, 2)[..., 0]            # even columns
        h = chain(xb.reshape(cin, rb * wo))
        o_ref[0] = h.reshape(o_ref.shape[1], rb, wo).astype(o_ref.dtype)
    else:
        for b in range(bn):            # static unroll: bn images per grid step
            x2d = x_ref[b]             # (Cin, T)
            h = chain(x2d)
            if use_identity:
                h = h + x2d.astype(jnp.float32)
            o_ref[b] = h.astype(o_ref.dtype)


def _fold_conv_bn(w, gamma, beta, mean, var):
    """Fold eval-mode BN into the 1x1 conv (f32 fold, bf16 weight, f32 bias)."""
    scale = gamma / jnp.sqrt(var + BN_EPS)                  # (Cout,)
    w2d = w[:, :, 0, 0] * scale[:, None]                    # (Cout, Cin)
    bias = (beta - mean * scale)[:, None]                   # (Cout, 1)
    return w2d.astype(jnp.bfloat16), bias.astype(jnp.float32)


def inverted_residual_block(x_nchw, params, *, stride, expand_ratio,
                            tile_hw=TILE_HW, out_dtype=None):
    """Forward pass matching the PyTorch InvertedResidualBlock (eval mode).

    x_nchw: (N, Cin, H, W).  params: PyTorch-shaped conv weights
    (Cout, Cin, 1, 1) plus BatchNorm (gamma, beta, mean, var) per stage.
    out_dtype: optionally emit bf16 activations to halve HBM writeback.
    """
    N, Cin, H, W = x_nchw.shape
    assert stride in (1, 2)
    has_expand = expand_ratio != 1
    hidden = Cin * expand_ratio
    Cout = params["w3"].shape[0]
    use_identity = (stride == 1) and (Cin == Cout)
    out_dtype = jnp.dtype(x_nchw.dtype if out_dtype is None else out_dtype)

    wb = []
    if has_expand:
        wb += list(_fold_conv_bn(params["w1"], params["g1"], params["be1"],
                                 params["m1"], params["v1"]))
    wb += list(_fold_conv_bn(params["w2"], params["g2"], params["be2"],
                             params["m2"], params["v2"]))
    wb += list(_fold_conv_bn(params["w3"], params["g3"], params["be3"],
                             params["m3"], params["v3"]))
    weight_bytes = sum(int(a.size) * a.dtype.itemsize for a in wb)
    k_chunk = _K_CHUNK if (hidden >= 1024 and hidden % _K_CHUNK == 0) else None
    mac = (Cin * hidden if has_expand else 0) + hidden * hidden + hidden * Cout

    def weight_specs(single_buffer):
        def spec(a):
            imap = lambda *_: (0,) * a.ndim        # constant block -> resident
            if single_buffer:
                # No point double-buffering an operand whose index never moves.
                return pl.BlockSpec(a.shape, imap, pipeline_mode=pl.Buffered(1))
            return pl.BlockSpec(a.shape, imap)
        return [spec(a) for a in wb]

    def run(in_kernel_subsample, single_buffer):
        x = x_nchw
        if stride == 2 and not in_kernel_subsample:
            # TODO(synk): fallback path only - materializes the subsample in
            # XLA (one extra HBM pass over x) before the pointwise kernel.
            x = x[:, :, ::2, ::2]

        if in_kernel_subsample:
            ho, wo = H // 2, W // 2
            if ho * wo <= tile_hw:
                rb = ho                                   # full spatial / step
            else:
                rb = min(ho, max(8, (tile_hw // wo) // 8 * 8))
            if N * pl.cdiv(ho, rb) < 2 and ho >= 16:
                rb = ((ho // 2) + 7) // 8 * 8             # keep both v7x TCs busy
            grid = (N, pl.cdiv(ho, rb))
            x_spec = pl.BlockSpec((1, Cin, 2 * rb, W), lambda n, t: (n, 0, t, 0))
            o_spec = pl.BlockSpec((1, Cout, rb, wo), lambda n, t: (n, 0, t, 0))
            out_struct = jax.ShapeDtypeStruct((N, Cout, ho, wo), out_dtype)
            bn = 1
            lanes = rb * wo
            p_out = ho * wo
            in_blk = Cin * 2 * rb * W * x.dtype.itemsize
            out_blk = Cout * rb * wo * out_dtype.itemsize
            inter = 4 * in_blk                    # in-VMEM subsample relayouts
            final_shape = None                    # already NCHW
        else:
            n_, _, h_, w_ = x.shape
            hw = h_ * w_
            x = x.reshape(n_, Cin, hw)            # free reshape, no transpose
            t = hw if hw <= tile_hw else tile_hw
            bn = 1
            if hw < tile_hw:
                # Pack several images per grid step at small spatial extents,
                # but keep >= 2 parallel steps for the v7x 2-TC split.
                bn = max(1, min(n_, tile_hw // hw))
                while bn > 1 and (n_ % bn != 0
                                  or (n_ // bn) * pl.cdiv(hw, t) < 2):
                    bn -= 1
            if n_ == 1 and pl.cdiv(hw, t) < 2 and hw >= 256:
                t = (((hw + 1) // 2) + 127) // 128 * 128
            grid = (n_ // bn, pl.cdiv(hw, t))
            x_spec = pl.BlockSpec((bn, Cin, t), lambda n, s: (n, 0, s))
            o_spec = pl.BlockSpec((bn, Cout, t), lambda n, s: (n, 0, s))
            out_struct = jax.ShapeDtypeStruct((n_, Cout, hw), out_dtype)
            lanes = t
            p_out = hw
            in_blk = bn * Cin * t * x.dtype.itemsize
            out_blk = bn * Cout * t * out_dtype.itemsize
            inter = 0
            final_shape = (n_, Cout, h_, w_)

        # Working-set estimate: double-buffered activation blocks + (possibly
        # single-buffered) weights + f32/bf16 intermediates; 64 MiB would be
        # the whole per-TC VMEM on v7x, so cap well below it.
        inter += bn * lanes * (hidden * 6 + max(Cin, hidden, Cout) * 8)
        vmem = (2 * in_blk + 2 * out_blk + 2 * weight_bytes + inter) * 3 // 2
        vmem = max(32 << 20, min(vmem + (8 << 20), 48 << 20))

        flops = 2 * N * p_out * mac
        bytes_accessed = (int(x.size) * x.dtype.itemsize
                          + N * Cout * p_out * out_dtype.itemsize
                          + weight_bytes)

        kernel = functools.partial(
            _block_kernel, has_expand=has_expand, use_identity=use_identity,
            bn=bn, subsample=in_kernel_subsample, k_chunk=k_chunk)

        out = pl.pallas_call(
            kernel,
            out_shape=out_struct,
            grid_spec=pltpu.PrefetchScalarGridSpec(
                num_scalar_prefetch=0,
                grid=grid,
                in_specs=[x_spec] + weight_specs(single_buffer),
                out_specs=o_spec),
            compiler_params=pltpu.CompilerParams(
                dimension_semantics=("parallel", "parallel"),
                vmem_limit_bytes=int(vmem)),
            cost_estimate=pl.CostEstimate(flops=flops, transcendentals=0,
                                          bytes_accessed=bytes_accessed),
        )(x, *wb)

        return out if final_shape is None else out.reshape(final_shape)

    # Preferred configurations first; defensive fallbacks keep the module
    # usable if a Mosaic version rejects the in-kernel subsample relayout or
    # single-buffered (pl.Buffered(1)) resident specs.
    attempts = []
    if stride == 2 and H % 2 == 0 and W % 2 == 0:
        attempts += [(True, True), (True, False)]
    attempts += [(False, True), (False, False)]
    err = None
    for cfg in attempts:
        try:
            return run(*cfg)
        except Exception as e:      # pragma: no cover - defensive fallback
            err = e
    raise err


def _reference(x_nchw, params, *, stride, expand_ratio):
    """Plain-JAX f32 reference matching the PyTorch module semantics."""
    Cin = x_nchw.shape[1]
    has_expand = expand_ratio != 1
    Cout = params["w3"].shape[0]
    use_identity = (stride == 1) and (Cin == Cout)

    def conv_bn_relu6(h, w, g, be, m, v):
        y = jnp.einsum("nchw,oc->nohw", h, w[:, :, 0, 0])
        s = g / jnp.sqrt(v + BN_EPS)
        sh = be - m * s
        y = y * s[None, :, None, None] + sh[None, :, None, None]
        return jnp.clip(y, 0.0, 6.0)

    h = x_nchw
    if has_expand:
        h = conv_bn_relu6(h, params["w1"], params["g1"], params["be1"],
                          params["m1"], params["v1"])
    if stride == 2:
        h = h[:, :, ::2, ::2]
    h = conv_bn_relu6(h, params["w2"], params["g2"], params["be2"],
                      params["m2"], params["v2"])
    h = conv_bn_relu6(h, params["w3"], params["g3"], params["be3"],
                      params["m3"], params["v3"])
    if use_identity:
        h = h + x_nchw
    return h


def make_params(key, in_channels, out_channels, expand_ratio):
    hidden = in_channels * expand_ratio
    keys = iter(jax.random.split(key, 20))
    p = {}

    def bn(c):
        g = 0.5 + jax.random.uniform(next(keys), (c,), jnp.float32)
        be = 0.1 * jax.random.normal(next(keys), (c,), jnp.float32)
        m = 0.1 * jax.random.normal(next(keys), (c,), jnp.float32)
        v = 0.5 + jax.random.uniform(next(keys), (c,), jnp.float32)
        return g, be, m, v

    if expand_ratio != 1:
        p["w1"] = 0.2 * jax.random.normal(
            next(keys), (hidden, in_channels, 1, 1), jnp.float32)
        p["g1"], p["be1"], p["m1"], p["v1"] = bn(hidden)
    p["w2"] = 0.2 * jax.random.normal(next(keys), (hidden, hidden, 1, 1),
                                      jnp.float32)
    p["g2"], p["be2"], p["m2"], p["v2"] = bn(hidden)
    p["w3"] = 0.2 * jax.random.normal(next(keys),
                                      (out_channels, hidden, 1, 1), jnp.float32)
    p["g3"], p["be3"], p["m3"], p["v3"] = bn(out_channels)
    return p


def _check(x, params, *, stride, expand_ratio, tag):
    out = jax.block_until_ready(
        inverted_residual_block(x, params, stride=stride,
                                expand_ratio=expand_ratio))
    ref = _reference(x, params, stride=stride, expand_ratio=expand_ratio)
    assert out.shape == ref.shape, (tag, out.shape, ref.shape)
    # bf16 MXU operands => loosened tolerance vs the f32 reference.
    err = float(jnp.max(jnp.abs(out.astype(jnp.float32) - ref)))
    assert jnp.allclose(out.astype(jnp.float32), ref, atol=1e-1,
                        rtol=1e-1), (tag, err)


if __name__ == "__main__":
    key = jax.random.PRNGKey(0)
    kxa, kpa, kxb, kpb, kxc, kpc = jax.random.split(key, 6)

    # Config A: stride=1, Cin == Cout -> identity residual, expand_ratio=4.
    xa = jax.random.normal(kxa, (2, 4, 16, 16), jnp.float32)
    pa = make_params(kpa, 4, 4, 4)
    _check(xa, pa, stride=1, expand_ratio=4, tag="A")

    # Config B: stride=2 (in-kernel subsample), expand_ratio=6, Cin != Cout.
    xb = jax.random.normal(kxb, (2, 8, 16, 16), jnp.float32)
    pb = make_params(kpb, 8, 16, 6)
    _check(xb, pb, stride=2, expand_ratio=6, tag="B")

    # Config C: expand_ratio=1 (no expand conv), small H*W -> multiple images
    # per grid step, identity residual.
    xc = jax.random.normal(kxc, (4, 8, 8, 8), jnp.float32)
    pc = make_params(kpc, 8, 8, 1)
    _check(xc, pc, stride=1, expand_ratio=1, tag="C")

    print("KERNEL_OK")
</pallas_src>

<mosaic_0001>
module attributes {stable_mosaic.version = 11 : i64} {
  func.func @_block_kernel(%arg0: i32, %arg1: i32, %arg2: memref<1x4x256xf32, #tpu.memory_space<vmem>>, %arg3: memref<16x4xbf16, #tpu.memory_space<vmem>>, %arg4: memref<16x1xf32, #tpu.memory_space<vmem>>, %arg5: memref<16x16xbf16, #tpu.memory_space<vmem>>, %arg6: memref<16x1xf32, #tpu.memory_space<vmem>>, %arg7: memref<4x16xbf16, #tpu.memory_space<vmem>>, %arg8: memref<4x1xf32, #tpu.memory_space<vmem>>, %arg9: memref<1x4x256xf32, #tpu.memory_space<vmem>>) attributes {dimension_semantics = [#tpu.dimension_semantics<parallel>, #tpu.dimension_semantics<parallel>], iteration_bounds = array<i64: 2, 1>, scalar_prefetch = 0 : i64, scratch_operands = 0 : i64, tpu.core_type = #tpu.core_type<tc>, window_params = [{transform_indices = @transform_0, window_bounds = array<i64: 1, 4, 256>}, {pipeline_mode = #tpu.pipeline_mode<synchronous>, transform_indices = @transform_1, window_bounds = array<i64: 16, 4>}, {pipeline_mode = #tpu.pipeline_mode<synchronous>, transform_indices = @transform_2, window_bounds = array<i64: 16, 1>}, {pipeline_mode = #tpu.pipeline_mode<synchronous>, transform_indices = @transform_3, window_bounds = array<i64: 16, 16>}, {pipeline_mode = #tpu.pipeline_mode<synchronous>, transform_indices = @transform_4, window_bounds = array<i64: 16, 1>}, {pipeline_mode = #tpu.pipeline_mode<synchronous>, transform_indices = @transform_5, window_bounds = array<i64: 4, 16>}, {pipeline_mode = #tpu.pipeline_mode<synchronous>, transform_indices = @transform_6, window_bounds = array<i64: 4, 1>}, {transform_indices = @transform_7, window_bounds = array<i64: 1, 4, 256>}]} {
    %c0 = arith.constant 0 : index
    %c0_0 = arith.constant 0 : index
    %c0_1 = arith.constant 0 : index
    %0 = vector.load %arg2[%c0, %c0_0, %c0_1] : memref<1x4x256xf32, #tpu.memory_space<vmem>>, vector<1x4x256xf32>
    %1 = vector.shape_cast %0 : vector<1x4x256xf32> to vector<4x256xf32>
    %2 = arith.truncf %1 : vector<4x256xf32> to vector<4x256xbf16>
    %c0_2 = arith.constant 0 : index
    %c0_3 = arith.constant 0 : index
    %3 = vector.load %arg3[%c0_2, %c0_3] : memref<16x4xbf16, #tpu.memory_space<vmem>>, vector<16x4xbf16>
    %cst = arith.constant dense<0.000000e+00> : vector<16x256xf32>
    %4 = tpu.matmul %3, %2, %cst {dimension_numbers = #tpu.dot_dimension_numbers<[1], [0], [0], [1], [0, 0, 1, 1], [], []>} : vector<16x4xbf16>, vector<4x256xbf16>, vector<16x256xf32> -> vector<16x256xf32>
    %c0_4 = arith.constant 0 : index
    %c0_5 = arith.constant 0 : index
    %5 = vector.load %arg4[%c0_4, %c0_5] : memref<16x1xf32, #tpu.memory_space<vmem>>, vector<16x1xf32>
    %6 = vector.broadcast %5 : vector<16x1xf32> to vector<16x256xf32>
    %7 = arith.addf %4, %6 : vector<16x256xf32>
    %cst_6 = arith.constant 0.000000e+00 : f32
    %cst_7 = arith.constant 6.000000e+00 : f32
    %8 = vector.broadcast %cst_6 : f32 to vector<16x256xf32>
    %9 = arith.maximumf %8, %7 : vector<16x256xf32>
    %10 = vector.broadcast %cst_7 : f32 to vector<16x256xf32>
    %11 = arith.minimumf %10, %9 : vector<16x256xf32>
    %12 = arith.truncf %11 : vector<16x256xf32> to vector<16x256xbf16>
    %c0_8 = arith.constant 0 : index
    %c0_9 = arith.constant 0 : index
    %13 = vector.load %arg5[%c0_8, %c0_9] : memref<16x16xbf16, #tpu.memory_space<vmem>>, vector<16x16xbf16>
    %cst_10 = arith.constant dense<0.000000e+00> : vector<16x256xf32>
    %14 = tpu.matmul %13, %12, %cst_10 {dimension_numbers = #tpu.dot_dimension_numbers<[1], [0], [0], [1], [0, 0, 1, 1], [], []>} : vector<16x16xbf16>, vector<16x256xbf16>, vector<16x256xf32> -> vector<16x256xf32>
    %c0_11 = arith.constant 0 : index
    %c0_12 = arith.constant 0 : index
    %15 = vector.load %arg6[%c0_11, %c0_12] : memref<16x1xf32, #tpu.memory_space<vmem>>, vector<16x1xf32>
    %16 = vector.broadcast %15 : vector<16x1xf32> to vector<16x256xf32>
    %17 = arith.addf %14, %16 : vector<16x256xf32>
    %cst_13 = arith.constant 0.000000e+00 : f32
    %cst_14 = arith.constant 6.000000e+00 : f32
    %18 = vector.broadcast %cst_13 : f32 to vector<16x256xf32>
    %19 = arith.maximumf %18, %17 : vector<16x256xf32>
    %20 = vector.broadcast %cst_14 : f32 to vector<16x256xf32>
    %21 = arith.minimumf %20, %19 : vector<16x256xf32>
    %22 = arith.truncf %21 : vector<16x256xf32> to vector<16x256xbf16>
    %c0_15 = arith.constant 0 : index
    %c0_16 = arith.constant 0 : index
    %23 = vector.load %arg7[%c0_15, %c0_16] : memref<4x16xbf16, #tpu.memory_space<vmem>>, vector<4x16xbf16>
    %cst_17 = arith.constant dense<0.000000e+00> : vector<4x256xf32>
    %24 = tpu.matmul %23, %22, %cst_17 {dimension_numbers = #tpu.dot_dimension_numbers<[1], [0], [0], [1], [0, 0, 1, 1], [], []>} : vector<4x16xbf16>, vector<16x256xbf16>, vector<4x256xf32> -> vector<4x256xf32>
    %c0_18 = arith.constant 0 : index
    %c0_19 = arith.constant 0 : index
    %25 = vector.load %arg8[%c0_18, %c0_19] : memref<4x1xf32, #tpu.memory_space<vmem>>, vector<4x1xf32>
    %26 = vector.broadcast %25 : vector<4x1xf32> to vector<4x256xf32>
    %27 = arith.addf %24, %26 : vector<4x256xf32>
    %cst_20 = arith.constant 0.000000e+00 : f32
    %cst_21 = arith.constant 6.000000e+00 : f32
    %28 = vector.broadcast %cst_20 : f32 to vector<4x256xf32>
    %29 = arith.maximumf %28, %27 : vector<4x256xf32>
    %30 = vector.broadcast %cst_21 : f32 to vector<4x256xf32>
    %31 = arith.minimumf %30, %29 : vector<4x256xf32>
    %32 = arith.addf %31, %1 : vector<4x256xf32>
    %c0_22 = arith.constant 0 : index
    %c0_23 = arith.constant 0 : index
    %c0_24 = arith.constant 0 : index
    %33 = vector.load %arg9[%c0_22, %c0_23, %c0_24] : memref<1x4x256xf32, #tpu.memory_space<vmem>>, vector<1x4x256xf32>
    %34 = vector.shape_cast %33 : vector<1x4x256xf32> to vector<4x256xf32>
    %35 = vector.shape_cast %32 : vector<4x256xf32> to vector<1x4x256xf32>
    tpu.vector_store %arg9[%c0_22, %c0_23, %c0_24], %35 {strides = array<i32>} : memref<1x4x256xf32, #tpu.memory_space<vmem>>, vector<1x4x256xf32>,
    return
  }
  func.func @transform_0(%arg0: i32, %arg1: i32) -> (i32, i32, i32) {
    %c0_i32 = arith.constant 0 : i32
    %c0_i32_0 = arith.constant 0 : i32
    return %arg0, %c0_i32, %arg1 : i32, i32, i32
  }
  func.func @transform_1(%arg0: i32, %arg1: i32) -> (i32, i32) {
    %c0_i32 = arith.constant 0 : i32
    %c0_i32_0 = arith.constant 0 : i32
    %c0_i32_1 = arith.constant 0 : i32
    return %c0_i32, %c0_i32_0 : i32, i32
  }
  func.func @transform_2(%arg0: i32, %arg1: i32) -> (i32, i32) {
    %c0_i32 = arith.constant 0 : i32
    %c0_i32_0 = arith.constant 0 : i32
    %c0_i32_1 = arith.constant 0 : i32
    return %c0_i32, %c0_i32_0 : i32, i32
  }
  func.func @transform_3(%arg0: i32, %arg1: i32) -> (i32, i32) {
    %c0_i32 = arith.constant 0 : i32
    %c0_i32_0 = arith.constant 0 : i32
    %c0_i32_1 = arith.constant 0 : i32
    return %c0_i32, %c0_i32_0 : i32, i32
  }
  func.func @transform_4(%arg0: i32, %arg1: i32) -> (i32, i32) {
    %c0_i32 = arith.constant 0 : i32
    %c0_i32_0 = arith.constant 0 : i32
    %c0_i32_1 = arith.constant 0 : i32
    return %c0_i32, %c0_i32_0 : i32, i32
  }
  func.func @transform_5(%arg0: i32, %arg1: i32) -> (i32, i32) {
    %c0_i32 = arith.constant 0 : i32
    %c0_i32_0 = arith.constant 0 : i32
    %c0_i32_1 = arith.constant 0 : i32
    return %c0_i32, %c0_i32_0 : i32, i32
  }
  func.func @transform_6(%arg0: i32, %arg1: i32) -> (i32, i32) {
    %c0_i32 = arith.constant 0 : i32
    %c0_i32_0 = arith.constant 0 : i32
    %c0_i32_1 = arith.constant 0 : i32
    return %c0_i32, %c0_i32_0 : i32, i32
  }
  func.func @transform_7(%arg0: i32, %arg1: i32) -> (i32, i32, i32) {
    %c0_i32 = arith.constant 0 : i32
    %c0_i32_0 = arith.constant 0 : i32
    return %arg0, %c0_i32, %arg1 : i32, i32, i32
  }
}

module attributes {stable_mosaic.version = 11 : i64} {
  func.func @_block_kernel(%arg0: i32, %arg1: i32, %arg2: memref<1x4x256xf32, #tpu.memory_space<vmem>>, %arg3: memref<16x4xbf16, #tpu.memory_space<vmem>>, %arg4: memref<16x1xf32, #tpu.memory_space<vmem>>, %arg5: memref<16x16xbf16, #tpu.memory_space<vmem>>, %arg6: memref<16x1xf32, #tpu.memory_space<vmem>>, %arg7: memref<4x16xbf16, #tpu.memory_space<vmem>>, %arg8: memref<4x1xf32, #tpu.memory_space<vmem>>, %arg9: memref<1x4x256xf32, #tpu.memory_space<vmem>>) attributes {dimension_semantics = [#tpu.dimension_semantics<parallel>, #tpu.dimension_semantics<parallel>], iteration_bounds = array<i64: 2, 1>, scalar_prefetch = 0 : i64, scratch_operands = 0 : i64, tpu.core_type = #tpu.core_type<tc>, window_params = [{transform_indices = @transform_0, window_bounds = array<i64: 1, 4, 256>}, {pipeline_mode = #tpu.pipeline_mode<synchronous>, transform_indices = @transform_1, window_bounds = array<i64: 16, 4>}, {pipeline_mode = #tpu.pipeline_mode<synchronous>, transform_indices = @transform_2, window_bounds = array<i64: 16, 1>}, {pipeline_mode = #tpu.pipeline_mode<synchronous>, transform_indices = @transform_3, window_bounds = array<i64: 16, 16>}, {pipeline_mode = #tpu.pipeline_mode<synchronous>, transform_indices = @transform_4, window_bounds = array<i64: 16, 1>}, {pipeline_mode = #tpu.pipeline_mode<synchronous>, transform_indices = @transform_5, window_bounds = array<i64: 4, 16>}, {pipeline_mode = #tpu.pipeline_mode<synchronous>, transform_indices = @transform_6, window_bounds = array<i64: 4, 1>}, {transform_indices = @transform_7, window_bounds = array<i64: 1, 4, 256>}]} {
    %c0 = arith.constant 0 : index
    %c0_0 = arith.constant 0 : index
    %c0_1 = arith.constant 0 : index
    %0 = vector.load %arg2[%c0, %c0_0, %c0_1] : memref<1x4x256xf32, #tpu.memory_space<vmem>>, vector<1x4x256xf32>
    %1 = vector.shape_cast %0 : vector<1x4x256xf32> to vector<4x256xf32>
    %2 = arith.truncf %1 : vector<4x256xf32> to vector<4x256xbf16>
    %c0_2 = arith.constant 0 : index
    %c0_3 = arith.constant 0 : index
    %3 = vector.load %arg3[%c0_2, %c0_3] : memref<16x4xbf16, #tpu.memory_space<vmem>>, vector<16x4xbf16>
    %cst = arith.constant dense<0.000000e+00> : vector<16x256xf32>
    %4 = tpu.matmul %3, %2, %cst {dimension_numbers = #tpu.dot_dimension_numbers<[1], [0], [0], [1], [0, 0, 1, 1], [], []>} : vector<16x4xbf16>, vector<4x256xbf16>, vector<16x256xf32> -> vector<16x256xf32>
    %c0_4 = arith.constant 0 : index
    %c0_5 = arith.constant 0 : index
    %5 = vector.load %arg4[%c0_4, %c0_5] : memref<16x1xf32, #tpu.memory_space<vmem>>, vector<16x1xf32>
    %6 = vector.broadcast %5 : vector<16x1xf32> to vector<16x256xf32>
    %7 = arith.addf %4, %6 : vector<16x256xf32>
    %cst_6 = arith.constant 0.000000e+00 : f32
    %cst_7 = arith.constant 6.000000e+00 : f32
    %8 = vector.broadcast %cst_6 : f32 to vector<16x256xf32>
    %9 = arith.maximumf %8, %7 : vector<16x256xf32>
    %10 = vector.broadcast %cst_7 : f32 to vector<16x256xf32>
    %11 = arith.minimumf %10, %9 : vector<16x256xf32>
    %12 = arith.truncf %11 : vector<16x256xf32> to vector<16x256xbf16>
    %c0_8 = arith.constant 0 : index
    %c0_9 = arith.constant 0 : index
    %13 = vector.load %arg5[%c0_8, %c0_9] : memref<16x16xbf16, #tpu.memory_space<vmem>>, vector<16x16xbf16>
    %cst_10 = arith.constant dense<0.000000e+00> : vector<16x256xf32>
    %14 = tpu.matmul %13, %12, %cst_10 {dimension_numbers = #tpu.dot_dimension_numbers<[1], [0], [0], [1], [0, 0, 1, 1], [], []>} : vector<16x16xbf16>, vector<16x256xbf16>, vector<16x256xf32> -> vector<16x256xf32>
    %c0_11 = arith.constant 0 : index
    %c0_12 = arith.constant 0 : index
    %15 = vector.load %arg6[%c0_11, %c0_12] : memref<16x1xf32, #tpu.memory_space<vmem>>, vector<16x1xf32>
    %16 = vector.broadcast %15 : vector<16x1xf32> to vector<16x256xf32>
    %17 = arith.addf %14, %16 : vector<16x256xf32>
    %cst_13 = arith.constant 0.000000e+00 : f32
    %cst_14 = arith.constant 6.000000e+00 : f32
    %18 = vector.broadcast %cst_13 : f32 to vector<16x256xf32>
    %19 = arith.maximumf %18, %17 : vector<16x256xf32>
    %20 = vector.broadcast %cst_14 : f32 to vector<16x256xf32>
    %21 = arith.minimumf %20, %19 : vector<16x256xf32>
    %22 = arith.truncf %21 : vector<16x256xf32> to vector<16x256xbf16>
    %c0_15 = arith.constant 0 : index
    %c0_16 = arith.constant 0 : index
    %23 = vector.load %arg7[%c0_15, %c0_16] : memref<4x16xbf16, #tpu.memory_space<vmem>>, vector<4x16xbf16>
    %cst_17 = arith.constant dense<0.000000e+00> : vector<4x256xf32>
    %24 = tpu.matmul %23, %22, %cst_17 {dimension_numbers = #tpu.dot_dimension_numbers<[1], [0], [0], [1], [0, 0, 1, 1], [], []>} : vector<4x16xbf16>, vector<16x256xbf16>, vector<4x256xf32> -> vector<4x256xf32>
    %c0_18 = arith.constant 0 : index
    %c0_19 = arith.constant 0 : index
    %25 = vector.load %arg8[%c0_18, %c0_19] : memref<4x1xf32, #tpu.memory_space<vmem>>, vector<4x1xf32>
    %26 = vector.broadcast %25 : vector<4x1xf32> to vector<4x256xf32>
    %27 = arith.addf %24, %26 : vector<4x256xf32>
    %cst_20 = arith.constant 0.000000e+00 : f32
    %cst_21 = arith.constant 6.000000e+00 : f32
    %28 = vector.broadcast %cst_20 : f32 to vector<4x256xf32>
    %29 = arith.maximumf %28, %27 : vector<4x256xf32>
    %30 = vector.broadcast %cst_21 : f32 to vector<4x256xf32>
    %31 = arith.minimumf %30, %29 : vector<4x256xf32>
    %32 = arith.addf %31, %1 : vector<4x256xf32>
    %c0_22 = arith.constant 0 : index
    %c0_23 = arith.constant 0 : index
    %c0_24 = arith.constant 0 : index
    %33 = vector.load %arg9[%c0_22, %c0_23, %c0_24] : memref<1x4x256xf32, #tpu.memory_space<vmem>>, vector<1x4x256xf32>
    %34 = vector.shape_cast %33 : vector<1x4x256xf32> to vector<4x256xf32>
    %35 = vector.shape_cast %32 : vector<4x256xf32> to vector<1x4x256xf32>
    tpu.vector_store %arg9[%c0_22, %c0_23, %c0_24], %35 {strides = array<i32>} : memref<1x4x256xf32, #tpu.memory_space<vmem>>, vector<1x4x256xf32>,
    return
  }
  func.func @transform_0(%arg0: i32, %arg1: i32) -> (i32, i32, i32) {
    %c0_i32 = arith.constant 0 : i32
    %c0_i32_0 = arith.constant 0 : i32
    return %arg0, %c0_i32, %arg1 : i32, i32, i32
  }
  func.func @transform_1(%arg0: i32, %arg1: i32) -> (i32, i32) {
    %c0_i32 = arith.constant 0 : i32
    %c0_i32_0 = arith.constant 0 : i32
    %c0_i32_1 = arith.constant 0 : i32
    return %c0_i32, %c0_i32_0 : i32, i32
  }
  func.func @transform_2(%arg0: i32, %arg1: i32) -> (i32, i32) {
    %c0_i32 = arith.constant 0 : i32
    %c0_i32_0 = arith.constant 0 : i32
    %c0_i32_1 = arith.constant 0 : i32
    return %c0_i32, %c0_i32_0 : i32, i32
  }
  func.func @transform_3(%arg0: i32, %arg1: i32) -> (i32, i32) {
    %c0_i32 = arith.constant 0 : i32
    %c0_i32_0 = arith.constant 0 : i32
    %c0_i32_1 = arith.constant 0 : i32
    return %c0_i32, %c0_i32_0 : i32, i32
  }
  func.func @transform_4(%arg0: i32, %arg1: i32) -> (i32, i32) {
    %c0_i32 = arith.constant 0 : i32
    %c0_i32_0 = arith.constant 0 : i32
    %c0_i32_1 = arith.constant 0 : i32
    return %c0_i32, %c0_i32_0 : i32, i32
  }
  func.func @transform_5(%arg0: i32, %arg1: i32) -> (i32, i32) {
    %c0_i32 = arith.constant 0 : i32
    %c0_i32_0 = arith.constant 0 : i32
    %c0_i32_1 = arith.constant 0 : i32
    return %c0_i32, %c0_i32_0 : i32, i32
  }
  func.func @transform_6(%arg0: i32, %arg1: i32) -> (i32, i32) {
    %c0_i32 = arith.constant 0 : i32
    %c0_i32_0 = arith.constant 0 : i32
    %c0_i32_1 = arith.constant 0 : i32
    return %c0_i32, %c0_i32_0 : i32, i32
  }
  func.func @transform_7(%arg0: i32, %arg1: i32) -> (i32, i32, i32) {
    %c0_i32 = arith.constant 0 : i32
    %c0_i32_0 = arith.constant 0 : i32
    return %arg0, %c0_i32, %arg1 : i32, i32, i32
  }
}

</mosaic_0001>

<bundles_post_ra>
// kernel: tpu_custom_call.1
= control target key start
LH: loop header
LB: loop body
LE: loop exit
PB: predicated region body
PF: predicated region fallthrough
CT: control target
= control target key end

     0   :  { %12 = vsyncpa [#allocation3], 0  ;;  %s983_s0 = inlined_call_operand.vmem [shape: f32[2,4,256], index: 0, kind: input, shape index: {}]   ;;  %s984_s1 = inlined_call_operand.vmem [shape: bf16[16,4], index: 1, kind: input, shape index: {}]   ;;  %s985_s2 = inlined_call_operand.vmem [shape: f32[16,1], index: 2, kind: input, shape index: {}]   ;;  %s986_s3 = inlined_call_operand.vmem [shape: bf16[16,16], index: 3, kind: input, shape index: {}]   ;;  %s987_s4 = inlined_call_operand.vmem [shape: f32[16,1], index: 4, kind: input, shape index: {}]   ;;  %s988_s5 = inlined_call_operand.vmem [shape: bf16[4,16], index: 5, kind: input, shape index: {}]   ;;  %s989_s6 = inlined_call_operand.vmem [shape: f32[4,1], index: 6, kind: input, shape index: {}]   ;;  %s990_s7 = inlined_call_operand.hbm [shape: f32[2,4,256], index: 7, kind: output, shape index: {}]  }
   0x1   :  { %14 = vsyncpa [#allocation3 + $0x1], 0  ;;  %s833_s24 = smov 0   ;;  %s835_s25 = smov 0  }
   0x2   :  { %s837_s26 = smov 0   ;;  %s839_s27 = smov 0  }
   0x3   :  { %s841_s28 = smov 0   ;;  %s843_s29 = smov 0  }
   0x4 LB: > { %s629_s30 = sadd.s32 4294967295, %s789_s29   ;;  %s630_s8 = sadd.s32 4294967294, %s789_s29   ;;  %s789_s29 = sphi %s843_s29, %s20_s29   ;;  %s785_s28 = sphi %s841_s28, %s997_s28   ;;  %s781_s27 = sphi %s839_s27, %s996_s27   ;;  %s777_s26 = sphi %s837_s26, %s995_s26   ;;  %s773_s25 = sphi %s835_s25, %s994_s25   ;;  %s769_s24 = sphi %s833_s24, %s993_s24  }
   0x5   : > { %s32_s9 = sadd.s32 1, %s785_s28  ;;  %s195_s10 = sadd.s32 1, %s777_s26 }
   0x6   : > { %p34_p0 = scmp.ge.s32.totalorder %s32_s9, 2  ;;  %p205_p1 = scmp.ne.s32.totalorder %s777_s26, %s773_s25 }
   0x7   : > { %p206_p2 = scmp.eq.s32.totalorder %s629_s30, 1  ;;  %p211_p3 = scmp.ne.s32.totalorder %s773_s25, %s769_s24 }
   0x8   : > { %s999_s9 = smov (%p34_p0, %s32_s9), 0  ;;  %p212_p5 = scmp.eq.s32.totalorder %s630_s8, 1 }
   0x9   : > { %p873_p4 = por %p206_p2, %p205_p1  ;;  %s190_s12 = ssub.s32 %s785_s28, %s999_s9 }
   0xa   : > { %p633_p6 = scmp.ge.s32.totalorder %s789_s29, 1  ;;  %p193_p7 = scmp.eq.s32.totalorder %s190_s12, 0 }
   0xb   : > { %p880_p8 = por %p212_p5, %p211_p3  ;;  %p261_p9 = scmp.lt.s32.totalorder %s789_s29, 3 }
   0xc   : > { %s886_s14 = scalar_select %p193_p7, %s777_s26, %s195_s10  }
   0xd   : > { %p262_p10 = pnand %p633_p6, %p261_p9 }
   0xe   : > { %p298_p11 = scmp.lt.s32.totalorder (!%p262_p10), %s781_s27, 1  ;;  %v791_v0 = vmov (!%p262_p10), 0   ;;  %v317_v1 = vld [vmem:[%s985_s2] sm:$0xff] (!%p262_p10)  ;;  %v318_v2 = vld [vmem:[%s985_s2 + $0x8] sm:$0xff] (!%p262_p10)  ;;  %vm338_vm0 = vcmask (!%p262_p10), 1041408   ;;  %vm334_vm1 = vcmask (!%p262_p10), 31744  }
   0xf   : > { %265 = sbr.rel (%p262_p10) target bundleno = 726 (0x2d6), region = 48  ;;  %377 = vmatprep.mubr.bf16.mxu0 (!%p262_p10), %v791_v0  ;;  %706 = vset.pattern.permute.xlu0 (!%p262_p10), %v791_v0  ;;  %v475_v6 = vld [vmem:[%s989_s6] sm:$0xf] (!%p262_p10)  ;;  %v401_v11 = vld [vmem:[%s987_s4 + $0x8] sm:$0xff] (!%p262_p10)  ;;  %vm417_vm2 = vcmask (!%p262_p10), 130048   ;;  %s649_s8 = sshll.u32 (!%p262_p10), %s781_s27, 7 }
  0x10   : > { %321 = vperm.xlu0 (!%p262_p10), %706, %v317_v1   ;;  %453 = vmatprep.mubr.bf16.mxu1 (!%p262_p10), %v791_v0  ;;  %v709_v9 = vld [vmem:[%s984_s1] sm:$0xff] (!%p262_p10)  }
  0x11   : > { %707 = vset.pattern.permute.xlu1 (!%p262_p10), %v791_v0  ;;  %v400_v10 = vld [vmem:[%s987_s4] sm:$0xff] (!%p262_p10) }
  0x12   : > { %404 = vperm.xlu1 (!%p262_p10), %707, %v400_v10   ;;  %v710_v32 = vld [vmem:[%s986_s3] sm:$0xff] (!%p262_p10)  }
  0x13   : > { %v474_v53 = vld [vmem:[%s988_s5] sm:$0x3] (!%p262_p10) }
  0x14   : > { %326 = vperm.xlu0 (!%p262_p10), %706, %v318_v2  }
  0x16   : > { %s299_s17 = scalar_select %p298_p11, %s781_s27, 1  ;;  %409 = vperm.xlu1 %707, %v401_v11  }
  0x17   : > { %s792_s27 = smov [#allocation2]  }
  0x18   : > { %s648_s20 = sshll.u32 %s299_s17, 3  ;;  %478 = vperm.xlu0 %706, %v475_v6   ;;  %s936_s17 = scalar_lea.hbm %s990_s7, %s649_s8 }
  0x19   : > { %s305_s23 = scalar_lea.vmem %s983_s0, %s648_s20  ;;  %s715_s20 = sshll.u32 %s792_s27, 4  ;;  %s716_s20 = int_to_ptr.vmem [resolvable:$false] %s715_s20 }
  0x1a   : > { %v899_v3 = vld [vmem:[%s305_s23] sm:$0xff]  ;;  %s294_s23 = sand.u32 1, %s773_s25   ;;  %s717_s21 = scalar_lea.vmem %s716_s20, 256 }
  0x1b   : > { %v903_v4 = vcombine.high %v899_v3, %v899_v3  ;;  %v313_v5 = vpack.c.bf16 %v899_v3, %v899_v3  ;;  %s634_s30 = sshll.u32 %s294_s23, 3  ;;  %s537_s18 = scalar_lea.sflag [#allocation3], %s294_s23 }
  0x1c   : > { %s296_s10 = scalar_lea.vmem [#allocation2], %s634_s30 }
  0x1d   : > { %v314_v7 = vpack.c.bf16 %v903_v4, %v903_v4  ;;  %v340_v8 = vsel %vm338_vm0, %v313_v5, 0  ;;  %s553_s12 = sshll.u32 %s296_s10, 4  ;;  %s938_s12 = int_to_ptr.vmem [resolvable:$true] %s553_s12 }
  0x1e   : > { %s711_s19 = scalar_lea.vmem %s938_s12, 128  ;;  %p718_p1 = scmp.lt.s32.totalorder %s938_s12, %s716_s20 }
  0x1f   : > { %638 = vmatprep.subr.msk.bf16.mxu0 %vm338_vm0, %v314_v7  ;;  %p712_p12 = scmp.ne.s32.totalorder %s938_s12, %s711_s19  ;;  %p719_p2 = scmp.lt.s32.totalorder %s717_s21, %s711_s19 }
  0x20   : > { %346 = vmatpush1.bf16.msra.mxu0 %v340_v8 }
  0x21   : > { %p713_p13 = pnand %p712_p12, %p873_p4  ;;  %p720_p3 = por %p719_p2, %p718_p1 }
  0x23   : > { %639 = vmatmul.mubr.msk.bf16.vlgmr.msra.gmra.mrb[0].mxu0 %vm334_vm1, %v709_v9  ;;  %p714_p0 = pneg %p713_p13 }
  0x24   : > { %516 = vmatprep.mubr.bf16.mxu0 %v791_v0 }
  0x25   : > { %p721_p5 = pnand %p720_p3, %p714_p0 }
  0x8f   : > { %v322_v12 = vpop.permute.xlu0 %321 }
  0x91   : > { %v405_v33 = vpop.permute.xlu1 %404 }
  0x93   : > { %v327_v16 = vpop.permute.xlu0 %326 }
  0x95   : > { %v410_v37 = vpop.permute.xlu1 %409 }
  0x97   : > { %v479_v54 = vpop.permute.xlu0 %478 }
  0xf6   : > { %v379_v13 = vpop.f32.mrb[0].mxu0 }
  0xf7   : > { %v380_v14 = vadd.f32 %v379_v13, %v322_v12  ;;  %v381_v15 = vpop.f32.mrb[1].mxu0 }
  0xf8   : > { %v382_v17 = vadd.f32 %v381_v15, %v322_v12  ;;  %v383_v18 = vpop.f32.mrb[2].mxu0 }
  0xf9   : > { %v388_v19 = vmax.f32 %v380_v14, 0.0  ;;  %v384_v20 = vadd.f32 %v383_v18, %v327_v16  ;;  %v385_v21 = vpop.f32.mrb[3].mxu0 }
  0xfa   : > { %v389_v22 = vmax.f32 %v382_v17, 0.0  ;;  %v386_v23 = vadd.f32 %v385_v21, %v327_v16 }
  0xfb   : > { %v390_v24 = vmax.f32 %v384_v20, 0.0  ;;  %v392_v26 = vmin.f32 %v388_v19, 6.0 }
  0xfc   : > { %v391_v25 = vmax.f32 %v386_v23, 0.0  ;;  %v393_v28 = vmin.f32 %v389_v22, 6.0 }
  0xfd   : > { %v394_v27 = vmin.f32 %v390_v24, 6.0 }
  0xfe   : > { %v395_v29 = vmin.f32 %v391_v25, 6.0 }
  0xff   : > { %v396_v30 = vpack.c.bf16 %v394_v27, %v392_v26 }
 0x100   : > { %v397_v31 = vpack.c.bf16 %v395_v29, %v393_v28 }
 0x102   : > { %421 = vmatprep.subr.bf16.mxu1 %v397_v31 }
 0x103   : > { %422 = vmatpush1.bf16.msra.mxu1 %v396_v30 }
 0x106   : > { %641 = vmatmul.mubr.msk.bf16.vlgmr.msra.gmra.mrb[0].mxu1 %vm417_vm2, %v710_v32 }
 0x1d9   : > { %v455_v34 = vpop.f32.mrb[0].mxu1 }
 0x1da   : > { %v456_v35 = vadd.f32 %v455_v34, %v405_v33  ;;  %v457_v36 = vpop.f32.mrb[1].mxu1 }
 0x1db   : > { %v458_v38 = vadd.f32 %v457_v36, %v405_v33  ;;  %v459_v39 = vpop.f32.mrb[2].mxu1 }
 0x1dc   : > { %v464_v40 = vmax.f32 %v456_v35, 0.0  ;;  %v460_v41 = vadd.f32 %v459_v39, %v410_v37  ;;  %v461_v42 = vpop.f32.mrb[3].mxu1 }
 0x1dd   : > { %v465_v43 = vmax.f32 %v458_v38, 0.0  ;;  %v462_v44 = vadd.f32 %v461_v42, %v410_v37 }
 0x1de   : > { %v466_v45 = vmax.f32 %v460_v41, 0.0  ;;  %v468_v47 = vmin.f32 %v464_v40, 6.0 }
 0x1df   : > { %v467_v46 = vmax.f32 %v462_v44, 0.0  ;;  %v469_v49 = vmin.f32 %v465_v43, 6.0 }
 0x1e0   : > { %v470_v48 = vmin.f32 %v466_v45, 6.0 }
 0x1e1   : > { %v471_v50 = vmin.f32 %v467_v46, 6.0 }
 0x1e2   : > { %v472_v51 = vpack.c.bf16 %v470_v48, %v468_v47 }
 0x1e3   : > { %v473_v52 = vpack.c.bf16 %v471_v50, %v469_v49 }
 0x1e5   : > { %484 = vmatprep.subr.bf16.mxu0 %v473_v52 }
 0x1e6   : > { %485 = vmatpush1.bf16.msra.mxu0 %v472_v51 }
 0x1e9   : > { %642 = vmatmul.mubr.msk.bf16.vlgmr.msra.gmra.mrb[4].mxu0 %vm417_vm2, %v474_v53 }
 0x2bc   : > { %v518_v55 = vpop.f32.mrb[4].mxu0 }
 0x2bd   : > { %v519_v56 = vadd.f32 %v518_v55, %v479_v54  ;;  %v520_v57 = vpop.f32.mrb[5].mxu0 }
 0x2be   : > { %v521_v58 = vadd.f32 %v520_v57, %v479_v54  ;;  %v522_v59 = vpop.f32.mrb[6].mxu0 }
 0x2bf   : > { %v525_v60 = vmax.f32 %v519_v56, 0.0  ;;  %v523_v61 = vpop.f32.mrb[7].mxu0 }
 0x2c0   : > { %v526_v62 = vmax.f32 %v521_v58, 0.0 }
 0x2c1   : > { %v527_v63 = vmin.f32 %v525_v60, 6.0 }
 0x2c2   : > { %v528_v0 = vmin.f32 %v526_v62, 6.0 }
 0x2c3   : > { %v529_v1 = vadd.f32 %v527_v63, %v899_v3 }
 0x2c4   : > { %v530_v2 = vadd.f32 %v528_v0, %v903_v4 }
 0x2c6   : > { %v533_v5 = vcombine.low %v529_v1, %v530_v2 }
 0x2c8   : > { %535 = vst [vmem:[%s296_s10] sm:$0xff] %v533_v5 }
 0x2c9   : > { %724 = shalt.err (!%p721_p5)
}
 0x2ca   : > { %s725_s22 = scalar_lea.hbm %s936_s17, 128  ;;  %s729_s8 = scalar_lea.hbm %s990_s7, 256 }
 0x2cb   : > { %p726_p6 = scmp.ne.s32.totalorder %s936_s17, %s725_s22  ;;  %p730_p10 = scmp.lt.u32.totalorder %s936_s17, %s990_s7 }
 0x2cc   : > { %p731_p11 = scmp.lt.u32.totalorder %s729_s8, %s725_s22  ;;  %p733_p13 = scmp.lt.u32.totalorder %s725_s22, %s936_s17 }
 0x2cd   : > { %p727_p7 = pnand %p726_p6, %p873_p4 }
 0x2ce   : > { %p732_p12 = por %p731_p11, %p730_p10 }
 0x2cf   : > { %p728_p9 = pneg %p727_p7 }
 0x2d0   : > { %p734_p0 = por %p733_p13, %p732_p12 }
 0x2d2   : > { %p735_p1 = pnand %p734_p0, %p728_p9 }
 0x2d4   : > { %738 = shalt.err (!%p735_p1)
}
 0x2d5   : > { %650 = dma.vmem_to_hbm [thread:$0]  (%p873_p4), %s938_s12, 128, %s936_s17, %s537_s18  }
 0x2d6 PF: > { %p656_p2 = scmp.ge.s32.totalorder %s789_s29, 2  ;;  %s565_s16 = sand.u32 1, %s769_s24  }
 0x2d7   : > { %s566_s19 = scalar_lea.sflag [#allocation3], %s565_s16 }
 0x2d8   : > { %p653_p3 = pnand %p656_p2, %p880_p8 }
 0x2da   : > { %764 = dma.done.wait (!%p653_p3), %s566_s19, 128  }
 0x2db   : > { %766 = vsyncadd (!%p653_p3), %s566_s19, 4294967168  ;;  %s20_s29 = sadd.s32 1, %s789_s29   ;;  %s993_s24 = smov %s773_s25 }
 0x2dc   : > { %p17_p5 = scmp.ge.s32.totalorder %s20_s29, 4   ;;  %s994_s25 = smov %s777_s26 }
 0x2dd   : > { %s995_s26 = smov %s886_s14  ;;  %s996_s27 = smov %s785_s28 }
 0x2de   : > { %s997_s28 = smov %s999_s9  ;;  %19 = sbr.rel (!%p17_p5) target bundleno = 4 (0x4), region = 83 }
 0x2e5   :  { %571 = vsyncpa [#allocation3], 1 }
 0x2e6   :  { %573 = vsyncpa [#allocation3 + $0x1], 1 }

// kernel: tpu_custom_call.1
= control target key start
LH: loop header
LB: loop body
LE: loop exit
PB: predicated region body
PF: predicated region fallthrough
CT: control target
= control target key end

     0   :  { %12 = vsyncpa [#allocation3], 0  ;;  %s983_s0 = inlined_call_operand.vmem [shape: f32[2,4,256], index: 0, kind: input, shape index: {}]   ;;  %s984_s1 = inlined_call_operand.vmem [shape: bf16[16,4], index: 1, kind: input, shape index: {}]   ;;  %s985_s2 = inlined_call_operand.vmem [shape: f32[16,1], index: 2, kind: input, shape index: {}]   ;;  %s986_s3 = inlined_call_operand.vmem [shape: bf16[16,16], index: 3, kind: input, shape index: {}]   ;;  %s987_s4 = inlined_call_operand.vmem [shape: f32[16,1], index: 4, kind: input, shape index: {}]   ;;  %s988_s5 = inlined_call_operand.vmem [shape: bf16[4,16], index: 5, kind: input, shape index: {}]   ;;  %s989_s6 = inlined_call_operand.vmem [shape: f32[4,1], index: 6, kind: input, shape index: {}]   ;;  %s990_s7 = inlined_call_operand.hbm [shape: f32[2,4,256], index: 7, kind: output, shape index: {}]  }
   0x1   :  { %14 = vsyncpa [#allocation3 + $0x1], 0  ;;  %s833_s24 = smov 0   ;;  %s835_s25 = smov 0  }
   0x2   :  { %s837_s26 = smov 0   ;;  %s839_s27 = smov 0  }
   0x3   :  { %s841_s28 = smov 0   ;;  %s843_s29 = smov 0  }
   0x4 LB: > { %s629_s30 = sadd.s32 4294967295, %s789_s29   ;;  %s630_s8 = sadd.s32 4294967294, %s789_s29   ;;  %s789_s29 = sphi %s843_s29, %s20_s29   ;;  %s785_s28 = sphi %s841_s28, %s997_s28   ;;  %s781_s27 = sphi %s839_s27, %s996_s27   ;;  %s777_s26 = sphi %s837_s26, %s995_s26   ;;  %s773_s25 = sphi %s835_s25, %s994_s25   ;;  %s769_s24 = sphi %s833_s24, %s993_s24  }
   0x5   : > { %s32_s9 = sadd.s32 1, %s785_s28  ;;  %s195_s10 = sadd.s32 1, %s777_s26 }
   0x6   : > { %p34_p0 = scmp.ge.s32.totalorder %s32_s9, 2  ;;  %p205_p1 = scmp.ne.s32.totalorder %s777_s26, %s773_s25 }
   0x7   : > { %p206_p2 = scmp.eq.s32.totalorder %s629_s30, 1  ;;  %p211_p3 = scmp.ne.s32.totalorder %s773_s25, %s769_s24 }
   0x8   : > { %s999_s9 = smov (%p34_p0, %s32_s9), 0  ;;  %p212_p5 = scmp.eq.s32.totalorder %s630_s8, 1 }
   0x9   : > { %p873_p4 = por %p206_p2, %p205_p1  ;;  %s190_s12 = ssub.s32 %s785_s28, %s999_s9 }
   0xa   : > { %p633_p6 = scmp.ge.s32.totalorder %s789_s29, 1  ;;  %p193_p7 = scmp.eq.s32.totalorder %s190_s12, 0 }
   0xb   : > { %p880_p8 = por %p212_p5, %p211_p3  ;;  %p261_p9 = scmp.lt.s32.totalorder %s789_s29, 3 }
   0xc   : > { %s886_s14 = scalar_select %p193_p7, %s777_s26, %s195_s10  }
   0xd   : > { %p262_p10 = pnand %p633_p6, %p261_p9 }
   0xe   : > { %p298_p11 = scmp.lt.s32.totalorder (!%p262_p10), %s781_s27, 1  ;;  %v791_v0 = vmov (!%p262_p10), 0   ;;  %v317_v1 = vld [vmem:[%s985_s2] sm:$0xff] (!%p262_p10)  ;;  %v318_v2 = vld [vmem:[%s985_s2 + $0x8] sm:$0xff] (!%p262_p10)  ;;  %vm338_vm0 = vcmask (!%p262_p10), 1041408   ;;  %vm334_vm1 = vcmask (!%p262_p10), 31744  }
   0xf   : > { %265 = sbr.rel (%p262_p10) target bundleno = 726 (0x2d6), region = 48  ;;  %377 = vmatprep.mubr.bf16.mxu0 (!%p262_p10), %v791_v0  ;;  %706 = vset.pattern.permute.xlu0 (!%p262_p10), %v791_v0  ;;  %v475_v6 = vld [vmem:[%s989_s6] sm:$0xf] (!%p262_p10)  ;;  %v401_v11 = vld [vmem:[%s987_s4 + $0x8] sm:$0xff] (!%p262_p10)  ;;  %vm417_vm2 = vcmask (!%p262_p10), 130048   ;;  %s649_s8 = sshll.u32 (!%p262_p10), %s781_s27, 7 }
  0x10   : > { %321 = vperm.xlu0 (!%p262_p10), %706, %v317_v1   ;;  %453 = vmatprep.mubr.bf16.mxu1 (!%p262_p10), %v791_v0  ;;  %v709_v9 = vld [vmem:[%s984_s1] sm:$0xff] (!%p262_p10)  }
  0x11   : > { %707 = vset.pattern.permute.xlu1 (!%p262_p10), %v791_v0  ;;  %v400_v10 = vld [vmem:[%s987_s4] sm:$0xff] (!%p262_p10) }
  0x12   : > { %404 = vperm.xlu1 (!%p262_p10), %707, %v400_v10   ;;  %v710_v32 = vld [vmem:[%s986_s3] sm:$0xff] (!%p262_p10)  }
  0x13   : > { %v474_v53 = vld [vmem:[%s988_s5] sm:$0x3] (!%p262_p10) }
  0x14   : > { %326 = vperm.xlu0 (!%p262_p10), %706, %v318_v2  }
  0x16   : > { %s299_s17 = scalar_select %p298_p11, %s781_s27, 1  ;;  %409 = vperm.xlu1 %707, %v401_v11  }
  0x17   : > { %s792_s27 = smov [#allocation2]  }
  0x18   : > { %s648_s20 = sshll.u32 %s299_s17, 3  ;;  %478 = vperm.xlu0 %706, %v475_v6   ;;  %s936_s17 = scalar_lea.hbm %s990_s7, %s649_s8 }
  0x19   : > { %s305_s23 = scalar_lea.vmem %s983_s0, %s648_s20  ;;  %s715_s20 = sshll.u32 %s792_s27, 4  ;;  %s716_s20 = int_to_ptr.vmem [resolvable:$false] %s715_s20 }
  0x1a   : > { %v899_v3 = vld [vmem:[%s305_s23] sm:$0xff]  ;;  %s294_s23 = sand.u32 1, %s773_s25   ;;  %s717_s21 = scalar_lea.vmem %s716_s20, 256 }
  0x1b   : > { %v903_v4 = vcombine.high %v899_v3, %v899_v3  ;;  %v313_v5 = vpack.c.bf16 %v899_v3, %v899_v3  ;;  %s634_s30 = sshll.u32 %s294_s23, 3  ;;  %s537_s18 = scalar_lea.sflag [#allocation3], %s294_s23 }
  0x1c   : > { %s296_s10 = scalar_lea.vmem [#allocation2], %s634_s30 }
  0x1d   : > { %v314_v7 = vpack.c.bf16 %v903_v4, %v903_v4  ;;  %v340_v8 = vsel %vm338_vm0, %v313_v5, 0  ;;  %s553_s12 = sshll.u32 %s296_s10, 4  ;;  %s938_s12 = int_to_ptr.vmem [resolvable:$true] %s553_s12 }
  0x1e   : > { %s711_s19 = scalar_lea.vmem %s938_s12, 128  ;;  %p718_p1 = scmp.lt.s32.totalorder %s938_s12, %s716_s20 }
  0x1f   : > { %638 = vmatprep.subr.msk.bf16.mxu0 %vm338_vm0, %v314_v7  ;;  %p712_p12 = scmp.ne.s32.totalorder %s938_s12, %s711_s19  ;;  %p719_p2 = scmp.lt.s32.totalorder %s717_s21, %s711_s19 }
  0x20   : > { %346 = vmatpush1.bf16.msra.mxu0 %v340_v8 }
  0x21   : > { %p713_p13 = pnand %p712_p12, %p873_p4  ;;  %p720_p3 = por %p719_p2, %p718_p1 }
  0x23   : > { %639 = vmatmul.mubr.msk.bf16.vlgmr.msra.gmra.mrb[0].mxu0 %vm334_vm1, %v709_v9  ;;  %p714_p0 = pneg %p713_p13 }
  0x24   : > { %516 = vmatprep.mubr.bf16.mxu0 %v791_v0 }
  0x25   : > { %p721_p5 = pnand %p720_p3, %p714_p0 }
  0x8f   : > { %v322_v12 = vpop.permute.xlu0 %321 }
  0x91   : > { %v405_v33 = vpop.permute.xlu1 %404 }
  0x93   : > { %v327_v16 = vpop.permute.xlu0 %326 }
  0x95   : > { %v410_v37 = vpop.permute.xlu1 %409 }
  0x97   : > { %v479_v54 = vpop.permute.xlu0 %478 }
  0xf6   : > { %v379_v13 = vpop.f32.mrb[0].mxu0 }
  0xf7   : > { %v380_v14 = vadd.f32 %v379_v13, %v322_v12  ;;  %v381_v15 = vpop.f32.mrb[1].mxu0 }
  0xf8   : > { %v382_v17 = vadd.f32 %v381_v15, %v322_v12  ;;  %v383_v18 = vpop.f32.mrb[2].mxu0 }
  0xf9   : > { %v388_v19 = vmax.f32 %v380_v14, 0.0  ;;  %v384_v20 = vadd.f32 %v383_v18, %v327_v16  ;;  %v385_v21 = vpop.f32.mrb[3].mxu0 }
  0xfa   : > { %v389_v22 = vmax.f32 %v382_v17, 0.0  ;;  %v386_v23 = vadd.f32 %v385_v21, %v327_v16 }
  0xfb   : > { %v390_v24 = vmax.f32 %v384_v20, 0.0  ;;  %v392_v26 = vmin.f32 %v388_v19, 6.0 }
  0xfc   : > { %v391_v25 = vmax.f32 %v386_v23, 0.0  ;;  %v393_v28 = vmin.f32 %v389_v22, 6.0 }
  0xfd   : > { %v394_v27 = vmin.f32 %v390_v24, 6.0 }
  0xfe   : > { %v395_v29 = vmin.f32 %v391_v25, 6.0 }
  0xff   : > { %v396_v30 = vpack.c.bf16 %v394_v27, %v392_v26 }
 0x100   : > { %v397_v31 = vpack.c.bf16 %v395_v29, %v393_v28 }
 0x102   : > { %421 = vmatprep.subr.bf16.mxu1 %v397_v31 }
 0x103   : > { %422 = vmatpush1.bf16.msra.mxu1 %v396_v30 }
 0x106   : > { %641 = vmatmul.mubr.msk.bf16.vlgmr.msra.gmra.mrb[0].mxu1 %vm417_vm2, %v710_v32 }
 0x1d9   : > { %v455_v34 = vpop.f32.mrb[0].mxu1 }
 0x1da   : > { %v456_v35 = vadd.f32 %v455_v34, %v405_v33  ;;  %v457_v36 = vpop.f32.mrb[1].mxu1 }
 0x1db   : > { %v458_v38 = vadd.f32 %v457_v36, %v405_v33  ;;  %v459_v39 = vpop.f32.mrb[2].mxu1 }
 0x1dc   : > { %v464_v40 = vmax.f32 %v456_v35, 0.0  ;;  %v460_v41 = vadd.f32 %v459_v39, %v410_v37  ;;  %v461_v42 = vpop.f32.mrb[3].mxu1 }
 0x1dd   : > { %v465_v43 = vmax.f32 %v458_v38, 0.0  ;;  %v462_v44 = vadd.f32 %v461_v42, %v410_v37 }
 0x1de   : > { %v466_v45 = vmax.f32 %v460_v41, 0.0  ;;  %v468_v47 = vmin.f32 %v464_v40, 6.0 }
 0x1df   : > { %v467_v46 = vmax.f32 %v462_v44, 0.0  ;;  %v469_v49 = vmin.f32 %v465_v43, 6.0 }
 0x1e0   : > { %v470_v48 = vmin.f32 %v466_v45, 6.0 }
 0x1e1   : > { %v471_v50 = vmin.f32 %v467_v46, 6.0 }
 0x1e2   : > { %v472_v51 = vpack.c.bf16 %v470_v48, %v468_v47 }
 0x1e3   : > { %v473_v52 = vpack.c.bf16 %v471_v50, %v469_v49 }
 0x1e5   : > { %484 = vmatprep.subr.bf16.mxu0 %v473_v52 }
 0x1e6   : > { %485 = vmatpush1.bf16.msra.mxu0 %v472_v51 }
 0x1e9   : > { %642 = vmatmul.mubr.msk.bf16.vlgmr.msra.gmra.mrb[4].mxu0 %vm417_vm2, %v474_v53 }
 0x2bc   : > { %v518_v55 = vpop.f32.mrb[4].mxu0 }
 0x2bd   : > { %v519_v56 = vadd.f32 %v518_v55, %v479_v54  ;;  %v520_v57 = vpop.f32.mrb[5].mxu0 }
 0x2be   : > { %v521_v58 = vadd.f32 %v520_v57, %v479_v54  ;;  %v522_v59 = vpop.f32.mrb[6].mxu0 }
 0x2bf   : > { %v525_v60 = vmax.f32 %v519_v56, 0.0  ;;  %v523_v61 = vpop.f32.mrb[7].mxu0 }
 0x2c0   : > { %v526_v62 = vmax.f32 %v521_v58, 0.0 }
 0x2c1   : > { %v527_v63 = vmin.f32 %v525_v60, 6.0 }
 0x2c2   : > { %v528_v0 = vmin.f32 %v526_v62, 6.0 }
 0x2c3   : > { %v529_v1 = vadd.f32 %v527_v63, %v899_v3 }
 0x2c4   : > { %v530_v2 = vadd.f32 %v528_v0, %v903_v4 }
 0x2c6   : > { %v533_v5 = vcombine.low %v529_v1, %v530_v2 }
 0x2c8   : > { %535 = vst [vmem:[%s296_s10] sm:$0xff] %v533_v5 }
 0x2c9   : > { %724 = shalt.err (!%p721_p5)
}
 0x2ca   : > { %s725_s22 = scalar_lea.hbm %s936_s17, 128  ;;  %s729_s8 = scalar_lea.hbm %s990_s7, 256 }
 0x2cb   : > { %p726_p6 = scmp.ne.s32.totalorder %s936_s17, %s725_s22  ;;  %p730_p10 = scmp.lt.u32.totalorder %s936_s17, %s990_s7 }
 0x2cc   : > { %p731_p11 = scmp.lt.u32.totalorder %s729_s8, %s725_s22  ;;  %p733_p13 = scmp.lt.u32.totalorder %s725_s22, %s936_s17 }
 0x2cd   : > { %p727_p7 = pnand %p726_p6, %p873_p4 }
 0x2ce   : > { %p732_p12 = por %p731_p11, %p730_p10 }
 0x2cf   : > { %p728_p9 = pneg %p727_p7 }
 0x2d0   : > { %p734_p0 = por %p733_p13, %p732_p12 }
 0x2d2   : > { %p735_p1 = pnand %p734_p0, %p728_p9 }
 0x2d4   : > { %738 = shalt.err (!%p735_p1)
}
 0x2d5   : > { %650 = dma.vmem_to_hbm [thread:$0]  (%p873_p4), %s938_s12, 128, %s936_s17, %s537_s18  }
 0x2d6 PF: > { %p656_p2 = scmp.ge.s32.totalorder %s789_s29, 2  ;;  %s565_s16 = sand.u32 1, %s769_s24  }
 0x2d7   : > { %s566_s19 = scalar_lea.sflag [#allocation3], %s565_s16 }
 0x2d8   : > { %p653_p3 = pnand %p656_p2, %p880_p8 }
 0x2da   : > { %764 = dma.done.wait (!%p653_p3), %s566_s19, 128  }
 0x2db   : > { %766 = vsyncadd (!%p653_p3), %s566_s19, 4294967168  ;;  %s20_s29 = sadd.s32 1, %s789_s29   ;;  %s993_s24 = smov %s773_s25 }
 0x2dc   : > { %p17_p5 = scmp.ge.s32.totalorder %s20_s29, 4   ;;  %s994_s25 = smov %s777_s26 }
 0x2dd   : > { %s995_s26 = smov %s886_s14  ;;  %s996_s27 = smov %s785_s28 }
 0x2de   : > { %s997_s28 = smov %s999_s9  ;;  %19 = sbr.rel (!%p17_p5) target bundleno = 4 (0x4), region = 83 }
 0x2e5   :  { %571 = vsyncpa [#allocation3], 1 }
 0x2e6   :  { %573 = vsyncpa [#allocation3 + $0x1], 1 }

</bundles_post_ra>
